<compile_context>
chip_gen: v7x
topology: tpu7x:2x2x1
jax: 0.10.0
libtpu: 0.0.40
codegen_flags: <defaults>
</compile_context>

<pallas_src>
import functools

import jax
import jax.numpy as jnp
from jax.experimental import pallas as pl
from jax.experimental.pallas import tpu as pltpu

LANE = 128
_VMEM_LIMIT = 32 * 1024 * 1024       # fits v5e/v6e/v7x scoped budgets
_X_RESIDENT_BYTES = 4 * 1024 * 1024  # keep X in VMEM if <= 4 MiB (x2 buffered)


def _round_up(x, m):
    return (x + m - 1) // m * m


def _pad2d(a, rows, cols):
    r, c = a.shape
    return jnp.pad(a, ((0, rows - r), (0, cols - c)))


def _plan(n, target=1024, max_pad_ratio=1.10):
    """Pick (n_pad, tile_m, tile_k) for the node dimension.

    Largest lane-multiple tile <= target whose zero padding of the node dim
    stays under ~10% (avoids the old collapse-to-128 on awkward N without
    blowing A_hat up with zero blocks).  The row axis is then split so the
    "parallel" grid dim has >= 2 blocks when possible (v7x megacore).
    """
    n_min = _round_up(max(n, 1), LANE)
    tile_k, n_pad = LANE, n_min
    for t in range(min(target, n_min), LANE - 1, -LANE):
        padded = _round_up(n_min, t)
        if padded <= max_pad_ratio * n_min:
            tile_k, n_pad = t, padded
            break
    tile_m = tile_k
    if n_pad // tile_m < 2 and n_pad // 2 >= 128:
        tile_m = n_pad // 2          # n_pad is a multiple of 128 -> tile_m % 16 == 0
    return n_pad, tile_m, tile_k


def _block_sparsity(a_pad, tile_m, tile_k):
    """Per-row-block table of nonzero A column-block indices + counts.

    Nonzero indices are packed to the front (ascending); the tail repeats the
    last nonzero index so the Pallas pipeline sees an unchanged block and skips
    the re-DMA.  The kernel guards the accumulate with k < count[i].
    """
    n_pad = a_pad.shape[0]
    n_rb, n_cb = n_pad // tile_m, n_pad // tile_k
    blocks = a_pad.reshape(n_rb, tile_m, n_cb, tile_k)
    nz = jnp.any(blocks != 0, axis=(1, 3))                       # (n_rb, n_cb)
    cnt = nz.sum(axis=1).astype(jnp.int32)                       # (n_rb,)
    order = jnp.argsort(jnp.logical_not(nz), axis=1, stable=True).astype(jnp.int32)
    last = jnp.take_along_axis(order, jnp.maximum(cnt - 1, 0)[:, None], axis=1)
    pos = jnp.arange(n_cb, dtype=jnp.int32)[None, :]
    tbl = jnp.where(pos < cnt[:, None], order, last).astype(jnp.int32)
    return tbl, cnt


# ----------------------------- Pallas kernel ------------------------------- #

def _gcn_layer_kernel(tbl_ref, cnt_ref, a_ref, x_ref, w_ref, b_ref, o_ref,
                      acc_ref, *, apply_relu, x_resident, tile_k):
    i = pl.program_id(0)
    k = pl.program_id(1)

    @pl.when(k == 0)
    def _():
        acc_ref[...] = jnp.zeros_like(acc_ref)

    # Skip all-zero A blocks entirely (their DMA was already skipped because
    # the prefetched table repeats the previous block index).
    @pl.when(k < cnt_ref[i])
    def _():
        if x_resident:
            col = tbl_ref[i, k]
            start = pl.multiple_of(col * tile_k, tile_k)
            x_blk = x_ref[pl.ds(start, tile_k), :]
        else:
            x_blk = x_ref[...]
        # Fused feature transform: recomputed per column block; MXU flops are
        # free under the HBM roofline of the dense A stream.
        xw = jnp.dot(x_blk, w_ref[...], preferred_element_type=jnp.float32)
        acc_ref[...] += jnp.dot(
            a_ref[...], xw.astype(jnp.bfloat16),
            preferred_element_type=jnp.float32)

    @pl.when(k == pl.num_programs(1) - 1)
    def _():
        out = acc_ref[...] + b_ref[...]          # bias / ReLU in f32 (v5e-safe)
        if apply_relu:
            out = jnp.maximum(out, 0.0)
        o_ref[...] = out.astype(o_ref.dtype)


def _gcn_layer(a_hat, x, w, b, tbl, cnt, *, tile_m, tile_k, apply_relu,
               out_dtype, x_resident):
    n_pad = a_hat.shape[0]
    f_in = x.shape[1]
    f_out = w.shape[1]
    n_rb = n_pad // tile_m
    n_cb = n_pad // tile_k

    if x_resident:
        # DMA'd once, revisited every grid step.
        x_spec = pl.BlockSpec((n_pad, f_in), lambda i, k, t, c: (0, 0))
    else:
        x_spec = pl.BlockSpec((tile_k, f_in), lambda i, k, t, c: (t[i, k], 0))

    kernel = functools.partial(
        _gcn_layer_kernel, apply_relu=apply_relu, x_resident=x_resident,
        tile_k=tile_k)

    out_itemsize = jnp.dtype(out_dtype).itemsize
    x_reads = 1 if x_resident else n_rb
    cost = pl.CostEstimate(
        flops=2 * n_pad * n_pad * f_out + 2 * n_rb * n_pad * f_in * f_out,
        transcendentals=0,
        bytes_accessed=(n_pad * n_pad * 2
                        + x_reads * n_pad * f_in * 2
                        + n_pad * f_out * out_itemsize),
    )

    grid_spec = pltpu.PrefetchScalarGridSpec(
        num_scalar_prefetch=2,
        grid=(n_rb, n_cb),
        in_specs=[
            # A_hat tile: column block chosen by the prefetched sparsity table.
            pl.BlockSpec((tile_m, tile_k), lambda i, k, t, c: (i, t[i, k])),
            x_spec,
            pl.BlockSpec((f_in, f_out), lambda i, k, t, c: (0, 0)),   # W resident
            pl.BlockSpec((1, f_out), lambda i, k, t, c: (0, 0)),      # bias resident
        ],
        out_specs=pl.BlockSpec((tile_m, f_out), lambda i, k, t, c: (i, 0)),
        scratch_shapes=[pltpu.VMEM((tile_m, f_out), jnp.float32)],
    )

    return pl.pallas_call(
        kernel,
        out_shape=jax.ShapeDtypeStruct((n_pad, f_out), out_dtype),
        grid_spec=grid_spec,
        compiler_params=pltpu.CompilerParams(
            dimension_semantics=("parallel", "arbitrary"),
            vmem_limit_bytes=_VMEM_LIMIT,
        ),
        cost_estimate=cost,
    )(tbl, cnt, a_hat, x, w, b)


# ------------------------------ forward pass ------------------------------- #

def gcn_forward(a_hat, x, w1, b1, w2, b2):
    n, f_in = x.shape
    hidden = w1.shape[1]
    f_out = w2.shape[1]

    f_in_p = _round_up(f_in, LANE)
    hid_p = _round_up(hidden, LANE)
    f_out_p = _round_up(f_out, LANE)
    n_pad, tile_m, tile_k = _plan(n)

    # Lane-dense zero padding.  Padded rows/cols of A_hat, X, W, b are zero, so
    # real outputs are unchanged (padded nodes never feed real nodes).
    a_p = _pad2d(a_hat, n_pad, n_pad).astype(jnp.bfloat16)
    x_p = _pad2d(x, n_pad, f_in_p).astype(jnp.bfloat16)
    w1_p = _pad2d(w1, f_in_p, hid_p).astype(jnp.bfloat16)
    b1_p = _pad2d(b1, 1, hid_p)                      # f32
    w2_p = _pad2d(w2, hid_p, f_out_p).astype(jnp.bfloat16)
    b2_p = _pad2d(b2, 1, f_out_p)                    # f32

    # One block-sparsity table shared by both layers (same A_hat).
    tbl, cnt = _block_sparsity(a_p, tile_m, tile_k)

    # Layer 1: fused transform + propagate + bias + ReLU.
    x1_resident = n_pad * f_in_p * 2 <= _X_RESIDENT_BYTES
    h1 = _gcn_layer(a_p, x_p, w1_p, b1_p, tbl, cnt,
                    tile_m=tile_m, tile_k=tile_k, apply_relu=True,
                    out_dtype=jnp.bfloat16, x_resident=x1_resident)

    # Layer 2: fused transform + propagate + bias.
    x2_resident = n_pad * hid_p * 2 <= _X_RESIDENT_BYTES
    out = _gcn_layer(a_p, h1, w2_p, b2_p, tbl, cnt,
                     tile_m=tile_m, tile_k=tile_k, apply_relu=False,
                     out_dtype=jnp.float32, x_resident=x2_resident)

    return out[:n, :f_out]


# ------------------------------- JAX glue ---------------------------------- #

def normalized_adjacency(edge_index, num_nodes):
    """Dense A_hat = D^{-1/2}(A + I)D^{-1/2}, matching PyG's gcn_norm."""
    src, dst = edge_index[0], edge_index[1]
    loop = jnp.arange(num_nodes, dtype=edge_index.dtype)
    src = jnp.concatenate([src, loop])
    dst = jnp.concatenate([dst, loop])
    adj = jnp.zeros((num_nodes, num_nodes), jnp.float32).at[dst, src].add(1.0)
    deg = adj.sum(axis=1)
    d_inv_sqrt = jnp.where(deg > 0, jax.lax.rsqrt(deg), 0.0)
    return d_inv_sqrt[:, None] * adj * d_inv_sqrt[None, :]


def init_params(key, f_in=20, hidden=32, f_out=20):
    """Deterministic glorot-style weights, zero biases (GCNConv defaults)."""
    k1, k2 = jax.random.split(key)

    def glorot(k, fan_in, fan_out):
        limit = (6.0 / (fan_in + fan_out)) ** 0.5
        return jax.random.uniform(k, (fan_in, fan_out), jnp.float32, -limit, limit)

    w1 = glorot(k1, f_in, hidden)
    b1 = jnp.zeros((1, hidden), jnp.float32)
    w2 = glorot(k2, hidden, f_out)
    b2 = jnp.zeros((1, f_out), jnp.float32)
    return w1, b1, w2, b2


def reference_forward(a_hat, x, w1, b1, w2, b2):
    h1 = jnp.maximum(a_hat @ (x @ w1) + b1, 0.0)
    return a_hat @ (h1 @ w2) + b2


# --------------------------------- main ------------------------------------ #

if __name__ == "__main__":
    key = jax.random.PRNGKey(0)
    k_x, k_p = jax.random.split(key)

    num_nodes, f_in = 16, 20

    # Deterministic small graph: undirected ring over 16 nodes.
    src = jnp.arange(num_nodes, dtype=jnp.int32)
    dst = (src + 1) % num_nodes
    edge_index = jnp.stack(
        [jnp.concatenate([src, dst]), jnp.concatenate([dst, src])], axis=0
    )  # [2, 2*N]

    x = jax.random.normal(k_x, (num_nodes, f_in), jnp.float32)
    w1, b1, w2, b2 = init_params(k_p)
    a_hat = normalized_adjacency(edge_index, num_nodes)

    out = jax.jit(gcn_forward)(a_hat, x, w1, b1, w2, b2)
    jax.block_until_ready(out)

    ref = reference_forward(a_hat, x, w1, b1, w2, b2)
    assert out.shape == (num_nodes, 20)
    max_err = float(jnp.max(jnp.abs(out - ref)))
    # MXU inputs are bf16 (f32 accumulation) -> bf16-level tolerance.
    assert jnp.allclose(out, ref, atol=5e-2, rtol=5e-2), f"max err {max_err}"

    print("KERNEL_OK")
</pallas_src>

<mosaic_0001>
module attributes {stable_mosaic.version = 11 : i64} {
  func.func @_gcn_layer_kernel(%arg0: i32, %arg1: i32, %arg2: memref<1x1xi32, #tpu.memory_space<smem>>, %arg3: memref<1xi32, #tpu.memory_space<smem>>, %arg4: memref<128x128xbf16, #tpu.memory_space<vmem>>, %arg5: memref<128x128xbf16, #tpu.memory_space<vmem>>, %arg6: memref<128x128xbf16, #tpu.memory_space<vmem>>, %arg7: memref<1x128xf32, #tpu.memory_space<vmem>>, %arg8: memref<128x128xf32, #tpu.memory_space<vmem>>, %arg9: memref<128x128xf32, #tpu.memory_space<vmem>>) attributes {dimension_semantics = [#tpu.dimension_semantics<parallel>, #tpu.dimension_semantics<arbitrary>], iteration_bounds = array<i64: 1, 1>, scalar_prefetch = 2 : i64, scratch_operands = 1 : i64, tpu.core_type = #tpu.core_type<tc>, window_params = [{transform_indices = @transform_0, window_bounds = array<i64: 128, 128>}, {pipeline_mode = #tpu.pipeline_mode<synchronous>, transform_indices = @transform_1, window_bounds = array<i64: 128, 128>}, {pipeline_mode = #tpu.pipeline_mode<synchronous>, transform_indices = @transform_2, window_bounds = array<i64: 128, 128>}, {pipeline_mode = #tpu.pipeline_mode<synchronous>, transform_indices = @transform_3, window_bounds = array<i64: 1, 128>}, {transform_indices = @transform_4, window_bounds = array<i64: 128, 128>}]} {
    %c0_i32 = arith.constant 0 : i32
    %0 = arith.cmpi eq, %arg1, %c0_i32 : i32
    %1 = arith.extui %0 : i1 to i32
    %c0_i32_0 = arith.constant 0 : i32
    %2 = arith.cmpi ne, %1, %c0_i32_0 : i32
    scf.if %2 {
      %cst = arith.constant 0.000000e+00 : f32
      %11 = vector.broadcast %cst : f32 to vector<128x128xf32>
      %c0 = arith.constant 0 : index
      %c0_4 = arith.constant 0 : index
      %12 = vector.load %arg9[%c0, %c0_4] : memref<128x128xf32, #tpu.memory_space<vmem>>, vector<128x128xf32>
      tpu.vector_store %arg9[%c0, %c0_4], %11 {strides = array<i32>} : memref<128x128xf32, #tpu.memory_space<vmem>>, vector<128x128xf32>,
    } else {
    }
    %3 = arith.index_cast %arg0 : i32 to index
    %4 = memref.load %arg3[%3] : memref<1xi32, #tpu.memory_space<smem>>
    %5 = arith.cmpi slt, %arg1, %4 : i32
    %6 = arith.extui %5 : i1 to i32
    %c0_i32_1 = arith.constant 0 : i32
    %7 = arith.cmpi ne, %6, %c0_i32_1 : i32
    scf.if %7 {
      %11 = arith.index_cast %arg0 : i32 to index
      %12 = arith.index_cast %arg1 : i32 to index
      %13 = memref.load %arg2[%11, %12] : memref<1x1xi32, #tpu.memory_space<smem>>
      %c128_i32 = arith.constant 128 : i32
      %14 = arith.muli %13, %c128_i32 : i32
      %15 = tpu.assume_multiple %14, 128 : i32
      %16 = arith.index_cast %15 : i32 to index
      %c0 = arith.constant 0 : index
      %17 = vector.load %arg5[%16, %c0] : memref<128x128xbf16, #tpu.memory_space<vmem>>, vector<128x128xbf16>
      %c0_4 = arith.constant 0 : index
      %c0_5 = arith.constant 0 : index
      %18 = vector.load %arg6[%c0_4, %c0_5] : memref<128x128xbf16, #tpu.memory_space<vmem>>, vector<128x128xbf16>
      %cst = arith.constant dense<0.000000e+00> : vector<128x128xf32>
      %19 = tpu.matmul %17, %18, %cst {dimension_numbers = #tpu.dot_dimension_numbers<[1], [0], [0], [1], [0, 0, 1, 1], [], []>} : vector<128x128xbf16>, vector<128x128xbf16>, vector<128x128xf32> -> vector<128x128xf32>
      %c0_6 = arith.constant 0 : index
      %c0_7 = arith.constant 0 : index
      %20 = vector.load %arg9[%c0_6, %c0_7] : memref<128x128xf32, #tpu.memory_space<vmem>>, vector<128x128xf32>
      %c0_8 = arith.constant 0 : index
      %c0_9 = arith.constant 0 : index
      %21 = vector.load %arg4[%c0_8, %c0_9] : memref<128x128xbf16, #tpu.memory_space<vmem>>, vector<128x128xbf16>
      %22 = arith.truncf %19 : vector<128x128xf32> to vector<128x128xbf16>
      %cst_10 = arith.constant dense<0.000000e+00> : vector<128x128xf32>
      %23 = tpu.matmul %21, %22, %cst_10 {dimension_numbers = #tpu.dot_dimension_numbers<[1], [0], [0], [1], [0, 0, 1, 1], [], []>} : vector<128x128xbf16>, vector<128x128xbf16>, vector<128x128xf32> -> vector<128x128xf32>
      %24 = arith.addf %20, %23 : vector<128x128xf32>
      %c0_11 = arith.constant 0 : index
      %c0_12 = arith.constant 0 : index
      %25 = vector.load %arg9[%c0_11, %c0_12] : memref<128x128xf32, #tpu.memory_space<vmem>>, vector<128x128xf32>
      tpu.vector_store %arg9[%c0_11, %c0_12], %24 {strides = array<i32>} : memref<128x128xf32, #tpu.memory_space<vmem>>, vector<128x128xf32>,
    } else {
    }
    %c0_i32_2 = arith.constant 0 : i32
    %8 = arith.cmpi eq, %arg1, %c0_i32_2 : i32
    %9 = arith.extui %8 : i1 to i32
    %c0_i32_3 = arith.constant 0 : i32
    %10 = arith.cmpi ne, %9, %c0_i32_3 : i32
    scf.if %10 {
      %c0 = arith.constant 0 : index
      %c0_4 = arith.constant 0 : index
      %11 = vector.load %arg9[%c0, %c0_4] : memref<128x128xf32, #tpu.memory_space<vmem>>, vector<128x128xf32>
      %c0_5 = arith.constant 0 : index
      %c0_6 = arith.constant 0 : index
      %12 = vector.load %arg7[%c0_5, %c0_6] : memref<1x128xf32, #tpu.memory_space<vmem>>, vector<1x128xf32>
      %13 = vector.broadcast %12 : vector<1x128xf32> to vector<128x128xf32>
      %14 = arith.addf %11, %13 : vector<128x128xf32>
      %c0_7 = arith.constant 0 : index
      %c0_8 = arith.constant 0 : index
      %15 = vector.load %arg8[%c0_7, %c0_8] : memref<128x128xf32, #tpu.memory_space<vmem>>, vector<128x128xf32>
      tpu.vector_store %arg8[%c0_7, %c0_8], %14 {strides = array<i32>} : memref<128x128xf32, #tpu.memory_space<vmem>>, vector<128x128xf32>,
    } else {
    }
    return
  }
  func.func @transform_0(%arg0: i32, %arg1: i32, %arg2: memref<1x1xi32, #tpu.memory_space<smem>>, %arg3: memref<1xi32, #tpu.memory_space<smem>>) -> (i32, i32) {
    %0 = arith.index_cast %arg0 : i32 to index
    %1 = arith.index_cast %arg1 : i32 to index
    %2 = memref.load %arg2[%0, %1] : memref<1x1xi32, #tpu.memory_space<smem>>
    %c0_i32 = arith.constant 0 : i32
    return %arg0, %2 : i32, i32
  }
  func.func @transform_1(%arg0: i32, %arg1: i32, %arg2: memref<1x1xi32, #tpu.memory_space<smem>>, %arg3: memref<1xi32, #tpu.memory_space<smem>>) -> (i32, i32) {
    %c0_i32 = arith.constant 0 : i32
    %c0_i32_0 = arith.constant 0 : i32
    %c0_i32_1 = arith.constant 0 : i32
    return %c0_i32, %c0_i32_0 : i32, i32
  }
  func.func @transform_2(%arg0: i32, %arg1: i32, %arg2: memref<1x1xi32, #tpu.memory_space<smem>>, %arg3: memref<1xi32, #tpu.memory_space<smem>>) -> (i32, i32) {
    %c0_i32 = arith.constant 0 : i32
    %c0_i32_0 = arith.constant 0 : i32
    %c0_i32_1 = arith.constant 0 : i32
    return %c0_i32, %c0_i32_0 : i32, i32
  }
  func.func @transform_3(%arg0: i32, %arg1: i32, %arg2: memref<1x1xi32, #tpu.memory_space<smem>>, %arg3: memref<1xi32, #tpu.memory_space<smem>>) -> (i32, i32) {
    %c0_i32 = arith.constant 0 : i32
    %c0_i32_0 = arith.constant 0 : i32
    %c0_i32_1 = arith.constant 0 : i32
    return %c0_i32, %c0_i32_0 : i32, i32
  }
  func.func @transform_4(%arg0: i32, %arg1: i32, %arg2: memref<1x1xi32, #tpu.memory_space<smem>>, %arg3: memref<1xi32, #tpu.memory_space<smem>>) -> (i32, i32) {
    %c0_i32 = arith.constant 0 : i32
    %c0_i32_0 = arith.constant 0 : i32
    return %arg0, %c0_i32 : i32, i32
  }
}

module attributes {stable_mosaic.version = 11 : i64} {
  func.func @_gcn_layer_kernel(%arg0: i32, %arg1: i32, %arg2: memref<1x1xi32, #tpu.memory_space<smem>>, %arg3: memref<1xi32, #tpu.memory_space<smem>>, %arg4: memref<128x128xbf16, #tpu.memory_space<vmem>>, %arg5: memref<128x128xbf16, #tpu.memory_space<vmem>>, %arg6: memref<128x128xbf16, #tpu.memory_space<vmem>>, %arg7: memref<1x128xf32, #tpu.memory_space<vmem>>, %arg8: memref<128x128xbf16, #tpu.memory_space<vmem>>, %arg9: memref<128x128xf32, #tpu.memory_space<vmem>>) attributes {dimension_semantics = [#tpu.dimension_semantics<parallel>, #tpu.dimension_semantics<arbitrary>], iteration_bounds = array<i64: 1, 1>, scalar_prefetch = 2 : i64, scratch_operands = 1 : i64, tpu.core_type = #tpu.core_type<tc>, window_params = [{transform_indices = @transform_0, window_bounds = array<i64: 128, 128>}, {pipeline_mode = #tpu.pipeline_mode<synchronous>, transform_indices = @transform_1, window_bounds = array<i64: 128, 128>}, {pipeline_mode = #tpu.pipeline_mode<synchronous>, transform_indices = @transform_2, window_bounds = array<i64: 128, 128>}, {pipeline_mode = #tpu.pipeline_mode<synchronous>, transform_indices = @transform_3, window_bounds = array<i64: 1, 128>}, {transform_indices = @transform_4, window_bounds = array<i64: 128, 128>}]} {
    %c0_i32 = arith.constant 0 : i32
    %0 = arith.cmpi eq, %arg1, %c0_i32 : i32
    %1 = arith.extui %0 : i1 to i32
    %c0_i32_0 = arith.constant 0 : i32
    %2 = arith.cmpi ne, %1, %c0_i32_0 : i32
    scf.if %2 {
      %cst = arith.constant 0.000000e+00 : f32
      %11 = vector.broadcast %cst : f32 to vector<128x128xf32>
      %c0 = arith.constant 0 : index
      %c0_4 = arith.constant 0 : index
      %12 = vector.load %arg9[%c0, %c0_4] : memref<128x128xf32, #tpu.memory_space<vmem>>, vector<128x128xf32>
      tpu.vector_store %arg9[%c0, %c0_4], %11 {strides = array<i32>} : memref<128x128xf32, #tpu.memory_space<vmem>>, vector<128x128xf32>,
    } else {
    }
    %3 = arith.index_cast %arg0 : i32 to index
    %4 = memref.load %arg3[%3] : memref<1xi32, #tpu.memory_space<smem>>
    %5 = arith.cmpi slt, %arg1, %4 : i32
    %6 = arith.extui %5 : i1 to i32
    %c0_i32_1 = arith.constant 0 : i32
    %7 = arith.cmpi ne, %6, %c0_i32_1 : i32
    scf.if %7 {
      %11 = arith.index_cast %arg0 : i32 to index
      %12 = arith.index_cast %arg1 : i32 to index
      %13 = memref.load %arg2[%11, %12] : memref<1x1xi32, #tpu.memory_space<smem>>
      %c128_i32 = arith.constant 128 : i32
      %14 = arith.muli %13, %c128_i32 : i32
      %15 = tpu.assume_multiple %14, 128 : i32
      %16 = arith.index_cast %15 : i32 to index
      %c0 = arith.constant 0 : index
      %17 = vector.load %arg5[%16, %c0] : memref<128x128xbf16, #tpu.memory_space<vmem>>, vector<128x128xbf16>
      %c0_4 = arith.constant 0 : index
      %c0_5 = arith.constant 0 : index
      %18 = vector.load %arg6[%c0_4, %c0_5] : memref<128x128xbf16, #tpu.memory_space<vmem>>, vector<128x128xbf16>
      %cst = arith.constant dense<0.000000e+00> : vector<128x128xf32>
      %19 = tpu.matmul %17, %18, %cst {dimension_numbers = #tpu.dot_dimension_numbers<[1], [0], [0], [1], [0, 0, 1, 1], [], []>} : vector<128x128xbf16>, vector<128x128xbf16>, vector<128x128xf32> -> vector<128x128xf32>
      %c0_6 = arith.constant 0 : index
      %c0_7 = arith.constant 0 : index
      %20 = vector.load %arg9[%c0_6, %c0_7] : memref<128x128xf32, #tpu.memory_space<vmem>>, vector<128x128xf32>
      %c0_8 = arith.constant 0 : index
      %c0_9 = arith.constant 0 : index
      %21 = vector.load %arg4[%c0_8, %c0_9] : memref<128x128xbf16, #tpu.memory_space<vmem>>, vector<128x128xbf16>
      %22 = arith.truncf %19 : vector<128x128xf32> to vector<128x128xbf16>
      %cst_10 = arith.constant dense<0.000000e+00> : vector<128x128xf32>
      %23 = tpu.matmul %21, %22, %cst_10 {dimension_numbers = #tpu.dot_dimension_numbers<[1], [0], [0], [1], [0, 0, 1, 1], [], []>} : vector<128x128xbf16>, vector<128x128xbf16>, vector<128x128xf32> -> vector<128x128xf32>
      %24 = arith.addf %20, %23 : vector<128x128xf32>
      %c0_11 = arith.constant 0 : index
      %c0_12 = arith.constant 0 : index
      %25 = vector.load %arg9[%c0_11, %c0_12] : memref<128x128xf32, #tpu.memory_space<vmem>>, vector<128x128xf32>
      tpu.vector_store %arg9[%c0_11, %c0_12], %24 {strides = array<i32>} : memref<128x128xf32, #tpu.memory_space<vmem>>, vector<128x128xf32>,
    } else {
    }
    %c0_i32_2 = arith.constant 0 : i32
    %8 = arith.cmpi eq, %arg1, %c0_i32_2 : i32
    %9 = arith.extui %8 : i1 to i32
    %c0_i32_3 = arith.constant 0 : i32
    %10 = arith.cmpi ne, %9, %c0_i32_3 : i32
    scf.if %10 {
      %c0 = arith.constant 0 : index
      %c0_4 = arith.constant 0 : index
      %11 = vector.load %arg9[%c0, %c0_4] : memref<128x128xf32, #tpu.memory_space<vmem>>, vector<128x128xf32>
      %c0_5 = arith.constant 0 : index
      %c0_6 = arith.constant 0 : index
      %12 = vector.load %arg7[%c0_5, %c0_6] : memref<1x128xf32, #tpu.memory_space<vmem>>, vector<1x128xf32>
      %13 = vector.broadcast %12 : vector<1x128xf32> to vector<128x128xf32>
      %14 = arith.addf %11, %13 : vector<128x128xf32>
      %cst = arith.constant 0.000000e+00 : f32
      %15 = vector.broadcast %cst : f32 to vector<128x128xf32>
      %16 = arith.maximumf %14, %15 : vector<128x128xf32>
      %17 = arith.truncf %16 : vector<128x128xf32> to vector<128x128xbf16>
      %c0_7 = arith.constant 0 : index
      %c0_8 = arith.constant 0 : index
      %18 = vector.load %arg8[%c0_7, %c0_8] : memref<128x128xbf16, #tpu.memory_space<vmem>>, vector<128x128xbf16>
      tpu.vector_store %arg8[%c0_7, %c0_8], %17 {strides = array<i32>} : memref<128x128xbf16, #tpu.memory_space<vmem>>, vector<128x128xbf16>,
    } else {
    }
    return
  }
  func.func @transform_0(%arg0: i32, %arg1: i32, %arg2: memref<1x1xi32, #tpu.memory_space<smem>>, %arg3: memref<1xi32, #tpu.memory_space<smem>>) -> (i32, i32) {
    %0 = arith.index_cast %arg0 : i32 to index
    %1 = arith.index_cast %arg1 : i32 to index
    %2 = memref.load %arg2[%0, %1] : memref<1x1xi32, #tpu.memory_space<smem>>
    %c0_i32 = arith.constant 0 : i32
    return %arg0, %2 : i32, i32
  }
  func.func @transform_1(%arg0: i32, %arg1: i32, %arg2: memref<1x1xi32, #tpu.memory_space<smem>>, %arg3: memref<1xi32, #tpu.memory_space<smem>>) -> (i32, i32) {
    %c0_i32 = arith.constant 0 : i32
    %c0_i32_0 = arith.constant 0 : i32
    %c0_i32_1 = arith.constant 0 : i32
    return %c0_i32, %c0_i32_0 : i32, i32
  }
  func.func @transform_2(%arg0: i32, %arg1: i32, %arg2: memref<1x1xi32, #tpu.memory_space<smem>>, %arg3: memref<1xi32, #tpu.memory_space<smem>>) -> (i32, i32) {
    %c0_i32 = arith.constant 0 : i32
    %c0_i32_0 = arith.constant 0 : i32
    %c0_i32_1 = arith.constant 0 : i32
    return %c0_i32, %c0_i32_0 : i32, i32
  }
  func.func @transform_3(%arg0: i32, %arg1: i32, %arg2: memref<1x1xi32, #tpu.memory_space<smem>>, %arg3: memref<1xi32, #tpu.memory_space<smem>>) -> (i32, i32) {
    %c0_i32 = arith.constant 0 : i32
    %c0_i32_0 = arith.constant 0 : i32
    %c0_i32_1 = arith.constant 0 : i32
    return %c0_i32, %c0_i32_0 : i32, i32
  }
  func.func @transform_4(%arg0: i32, %arg1: i32, %arg2: memref<1x1xi32, #tpu.memory_space<smem>>, %arg3: memref<1xi32, #tpu.memory_space<smem>>) -> (i32, i32) {
    %c0_i32 = arith.constant 0 : i32
    %c0_i32_0 = arith.constant 0 : i32
    return %arg0, %c0_i32 : i32, i32
  }
}

</mosaic_0001>

<bundles_post_ra>
// kernel: gcn_forward.3
= control target key start
LH: loop header
LB: loop body
LE: loop exit
PB: predicated region body
PF: predicated region fallthrough
CT: control target
= control target key end

     0   :  { %v751_v0 = vmov 0.0   ;;  %s894_s0 = inlined_call_operand.<no memory space> [shape: s32[1,1], index: 0, kind: input, shape index: {}]   ;;  %s895_s1 = inlined_call_operand.<no memory space> [shape: s32[1], index: 1, kind: input, shape index: {}]   ;;  %s896_s3 = inlined_call_operand.vmem [shape: bf16[128,128], index: 3, kind: input, shape index: {}]   ;;  %s897_s4 = inlined_call_operand.vmem [shape: bf16[128,128], index: 4, kind: input, shape index: {}]   ;;  %s898_s5 = inlined_call_operand.vmem [shape: f32[1,128], index: 5, kind: input, shape index: {}]   ;;  %s899_s6 = inlined_call_operand.vmem [shape: f32[128,128], index: 6, kind: output, shape index: {}]   ;;  %s900_s2 = inlined_call_operand.vmem [shape: bf16[128,128], index: 2, kind: input, shape index: {}]  }
   0x1   :  { %11 = sst [smem:[#allocation4]] %s894_s0  ;;  %p45_p0 = scmp.lt.s32.totalorder %s894_s0, 0  ;;  %58 = vst [vmem:[#allocation2] sm:$0xff] %v751_v0  ;;  %59 = vst [vmem:[#allocation2 + $0x8] sm:$0xff] %v751_v0 }
   0x2   :  { %60 = vst [vmem:[#allocation2 + $0x10] sm:$0xff] %v751_v0  ;;  %61 = vst [vmem:[#allocation2 + $0x18] sm:$0xff] %v751_v0  ;;  %p602_p1 = scmp.le.s32.totalorder %s895_s1, 0 }
   0x3   :  { %62 = vst [vmem:[#allocation2 + $0x20] sm:$0xff] %v751_v0  ;;  %63 = vst [vmem:[#allocation2 + $0x28] sm:$0xff] %v751_v0  ;;  %s902_s0 = smov (!%p45_p0, %s894_s0), 0  ;;  %v727_v1 = vld [vmem:[%s897_s4] sm:$0xff] (!%p602_p1)   ;;  %v728_v2 = vld [vmem:[%s897_s4 + $0x8] sm:$0xff] (!%p602_p1)   ;;  %s82_s1 = sld [smem:[#allocation4]] (!%p602_p1) }
   0x4   :  { %64 = vst [vmem:[#allocation2 + $0x30] sm:$0xff] %v751_v0  ;;  %65 = vst [vmem:[#allocation2 + $0x38] sm:$0xff] %v751_v0  ;;  %s600_s29 = sshll.u32 %s902_s0, 2  ;;  %78 = sbr.rel (%p602_p1) target bundleno = 527 (0x20f), region = 25  ;;  %662 = vmatprep.subr.bf16.mxu0 (!%p602_p1), %v727_v1  ;;  %v729_v3 = vld [vmem:[%s897_s4 + $0x10] sm:$0xff] (!%p602_p1)   ;;  %v730_v4 = vld [vmem:[%s897_s4 + $0x18] sm:$0xff] (!%p602_p1)  }
   0x5   :  { %66 = vst [vmem:[#allocation2 + $0x40] sm:$0xff] %v751_v0  ;;  %67 = vst [vmem:[#allocation2 + $0x48] sm:$0xff] %v751_v0  ;;  %s803_s8 = scalar_lea.vmem %s900_s2, %s600_s29  ;;  %663 = vmatpush3.bf16.msra.mxu0 (!%p602_p1), %v727_v1  ;;  %v731_v5 = vld [vmem:[%s897_s4 + $0x20] sm:$0xff] (!%p602_p1)   ;;  %v732_v6 = vld [vmem:[%s897_s4 + $0x28] sm:$0xff] (!%p602_p1)  }
   0x6   :  { %68 = vst [vmem:[#allocation2 + $0x50] sm:$0xff] %v751_v0  ;;  %69 = vst [vmem:[#allocation2 + $0x58] sm:$0xff] %v751_v0  ;;  %664 = vmatprep.subr.bf16.mxu0 (!%p602_p1), %v728_v2  ;;  %v733_v8 = vld [vmem:[%s897_s4 + $0x30] sm:$0xff] (!%p602_p1)   ;;  %v734_v9 = vld [vmem:[%s897_s4 + $0x38] sm:$0xff] (!%p602_p1)  }
   0x7   :  { %70 = vst [vmem:[#allocation2 + $0x60] sm:$0xff] %v751_v0  ;;  %71 = vst [vmem:[#allocation2 + $0x68] sm:$0xff] %v751_v0  ;;  %v743_v17 = vld [vmem:[%s803_s8] sm:$0xff] (!%p602_p1)   ;;  %v744_v42 = vld [vmem:[%s803_s8 + $0x8] sm:$0xff] (!%p602_p1)  }
   0x8   :  { %72 = vst [vmem:[#allocation2 + $0x70] sm:$0xff] %v751_v0  ;;  %73 = vst [vmem:[#allocation2 + $0x78] sm:$0xff] %v751_v0  ;;  %710 = vmatprep.mubr.bf16.mxu1 (!%p602_p1), %v743_v17  ;;  %v745_v43 = vld [vmem:[%s803_s8 + $0x10] sm:$0xff] (!%p602_p1)   ;;  %v746_v44 = vld [vmem:[%s803_s8 + $0x18] sm:$0xff] (!%p602_p1)  }
   0x9   :  { %665 = vmatpush3.bf16.msra.mxu0 (!%p602_p1), %v728_v2  ;;  %s603_s19 = sshll.u32 (!%p602_p1), %s82_s1, 7  ;;  %v747_v45 = vld [vmem:[%s803_s8 + $0x20] sm:$0xff] (!%p602_p1)   ;;  %v748_v46 = vld [vmem:[%s803_s8 + $0x28] sm:$0xff] (!%p602_p1)   ;;  %v749_v47 = vld [vmem:[%s803_s8 + $0x30] sm:$0xff] (!%p602_p1)  }
   0xa   :  { %666 = vmatprep.subr.bf16.mxu0 (!%p602_p1), %v729_v3  ;;  %s84_s20 = sshra.s32 (!%p602_p1), %s603_s19, 3  ;;  %v750_v48 = vld [vmem:[%s803_s8 + $0x38] sm:$0xff] (!%p602_p1)   ;;  %v315_v49 = vld [vmem:[#allocation2 + $0x10] sm:$0xff] (!%p602_p1)  ;;  %v313_v50 = vld [vmem:[#allocation2] sm:$0xff] (!%p602_p1) }
   0xb   :  { %s604_s23 = sshll.u32 %s84_s20, 2  ;;  %v316_v52 = vld [vmem:[#allocation2 + $0x18] sm:$0xff]  ;;  %v314_v55 = vld [vmem:[#allocation2 + $0x8] sm:$0xff]  ;;  %v319_v61 = vld [vmem:[#allocation2 + $0x30] sm:$0xff] }
   0xc   :  { %s87_s26 = scalar_lea.vmem %s896_s3, %s604_s23  ;;  %v317_v62 = vld [vmem:[#allocation2 + $0x20] sm:$0xff]  ;;  %v320_v0 = vld [vmem:[#allocation2 + $0x38] sm:$0xff] }
   0xd   :  { %667 = vmatpush3.bf16.msra.mxu0 %v729_v3  ;;  %v735_v7 = vld [vmem:[%s87_s26] sm:$0xff]   ;;  %v736_v10 = vld [vmem:[%s87_s26 + $0x8] sm:$0xff]   ;;  %v737_v11 = vld [vmem:[%s87_s26 + $0x10] sm:$0xff]  }
   0xe   :  { %668 = vmatprep.subr.bf16.mxu0 %v730_v4  ;;  %678 = vmatprep.mubr.bf16.mxu0 %v735_v7  ;;  %v738_v12 = vld [vmem:[%s87_s26 + $0x18] sm:$0xff]   ;;  %v739_v13 = vld [vmem:[%s87_s26 + $0x20] sm:$0xff]   ;;  %v740_v14 = vld [vmem:[%s87_s26 + $0x28] sm:$0xff]  }
   0xf   :  { %v741_v15 = vld [vmem:[%s87_s26 + $0x30] sm:$0xff]   ;;  %v742_v16 = vld [vmem:[%s87_s26 + $0x38] sm:$0xff]   ;;  %v318_v3 = vld [vmem:[#allocation2 + $0x28] sm:$0xff] }
  0x11   :  { %669 = vmatpush3.bf16.msra.mxu0 %v730_v4 }
  0x12   :  { %670 = vmatprep.subr.bf16.mxu0 %v731_v5 }
  0x15   :  { %671 = vmatpush3.bf16.msra.mxu0 %v731_v5 }
  0x16   :  { %672 = vmatprep.subr.bf16.mxu0 %v732_v6 }
  0x19   :  { %673 = vmatpush3.bf16.msra.mxu0 %v732_v6 }
  0x1a   :  { %674 = vmatprep.subr.bf16.mxu0 %v733_v8 }
  0x1d   :  { %675 = vmatpush3.bf16.msra.mxu0 %v733_v8 }
  0x1e   :  { %676 = vmatprep.subr.bf16.mxu0 %v734_v9 }
  0x21   :  { %677 = vmatpush3.bf16.msra.mxu0 %v734_v9  ;;  %v323_v9 = vld [vmem:[#allocation2 + $0x50] sm:$0xff] }
  0x24   :  { %679 = vmatmul.mubr.bf16.vlgmr.msra.gmra.mrb[0].mxu0 %v736_v10  ;;  %v321_v10 = vld [vmem:[#allocation2 + $0x40] sm:$0xff] }
  0x25   :  { %682 = vmatprep.mubr.bf16.mxu0 %v737_v11 }
  0x2c   :  { %683 = vmatmul.mubr.bf16.gmra.mrb[4].mxu0 %v738_v12  ;;  %v324_v12 = vld [vmem:[#allocation2 + $0x58] sm:$0xff] }
  0x2d   :  { %686 = vmatprep.mubr.bf16.mxu0 %v739_v13 }
  0x34   :  { %687 = vmatmul.mubr.bf16.gmra.mrb[8].mxu0 %v740_v14 }
  0x35   :  { %690 = vmatprep.mubr.bf16.mxu0 %v741_v15  ;;  %v322_v15 = vld [vmem:[#allocation2 + $0x48] sm:$0xff] }
  0x3c   :  { %691 = vmatmul.mubr.bf16.gmra.mrb[12].mxu0 %v742_v16 }
  0xf7   :  { %v680_v18 = vpop.f32.mrb[0].mxu0 }
  0xf8   :  { %v250_v19 = vpop.f32.mrb[1].mxu0 }
  0xf9   :  { %v681_v20 = vpop.f32.mrb[2].mxu0 }
  0xfa   :  { %v346_v21 = vpack.c.bf16 %v681_v20, %v680_v18  ;;  %v253_v22 = vpop.f32.mrb[3].mxu0 }
  0xfb   :  { %v345_v23 = vpack.c.bf16 %v253_v22, %v250_v19  ;;  %v325_v22 = vld [vmem:[#allocation2 + $0x60] sm:$0xff] }
  0xfd   :  { %694 = vmatprep.subr.bf16.mxu1 %v345_v23 }
  0xfe   :  { %695 = vmatpush3.bf16.msra.mxu1 %v345_v23 }
  0xff   :  { %v684_v24 = vpop.f32.mrb[4].mxu0  ;;  %696 = vmatprep.subr.bf16.mxu1 %v346_v21 }
 0x100   :  { %v266_v25 = vpop.f32.mrb[5].mxu0 }
 0x101   :  { %v685_v26 = vpop.f32.mrb[6].mxu0 }
 0x102   :  { %v348_v27 = vpack.c.bf16 %v685_v26, %v684_v24  ;;  %v269_v28 = vpop.f32.mrb[7].mxu0  ;;  %697 = vmatpush3.bf16.msra.mxu1 %v346_v21  ;;  %v327_v21 = vld [vmem:[#allocation2 + $0x70] sm:$0xff]  ;;  %v328_v24 = vld [vmem:[#allocation2 + $0x78] sm:$0xff] }
 0x103   :  { %v347_v29 = vpack.c.bf16 %v269_v28, %v266_v25 }
 0x105   :  { %698 = vmatprep.subr.bf16.mxu1 %v347_v29 }
 0x106   :  { %699 = vmatpush3.bf16.msra.mxu1 %v347_v29 }
 0x107   :  { %v688_v30 = vpop.f32.mrb[8].mxu0  ;;  %700 = vmatprep.subr.bf16.mxu1 %v348_v27 }
 0x108   :  { %v282_v31 = vpop.f32.mrb[9].mxu0 }
 0x109   :  { %v689_v32 = vpop.f32.mrb[10].mxu0 }
 0x10a   :  { %v350_v33 = vpack.c.bf16 %v689_v32, %v688_v30  ;;  %v285_v34 = vpop.f32.mrb[11].mxu0  ;;  %701 = vmatpush3.bf16.msra.mxu1 %v348_v27  ;;  %v326_v27 = vld [vmem:[#allocation2 + $0x68] sm:$0xff] }
 0x10b   :  { %v349_v35 = vpack.c.bf16 %v285_v34, %v282_v31 }
 0x10d   :  { %702 = vmatprep.subr.bf16.mxu1 %v349_v35 }
 0x10e   :  { %703 = vmatpush3.bf16.msra.mxu1 %v349_v35 }
 0x10f   :  { %v692_v36 = vpop.f32.mrb[12].mxu0  ;;  %704 = vmatprep.subr.bf16.mxu1 %v350_v33 }
 0x110   :  { %v298_v37 = vpop.f32.mrb[13].mxu0 }
 0x111   :  { %v693_v38 = vpop.f32.mrb[14].mxu0 }
 0x112   :  { %v352_v39 = vpack.c.bf16 %v693_v38, %v692_v36  ;;  %v301_v40 = vpop.f32.mrb[15].mxu0  ;;  %705 = vmatpush3.bf16.msra.mxu1 %v350_v33 }
 0x113   :  { %v351_v41 = vpack.c.bf16 %v301_v40, %v298_v37 }
 0x115   :  { %706 = vmatprep.subr.bf16.mxu1 %v351_v41 }
 0x116   :  { %707 = vmatpush3.bf16.msra.mxu1 %v351_v41 }
 0x117   :  { %708 = vmatprep.subr.bf16.mxu1 %v352_v39 }
 0x11a   :  { %709 = vmatpush3.bf16.msra.mxu1 %v352_v39 }
 0x11d   :  { %711 = vmatmul.mubr.bf16.vlgmr.msra.gmra.mrb[0].mxu1 %v744_v42 }
 0x11e   :  { %714 = vmatprep.mubr.bf16.mxu1 %v745_v43 }
 0x125   :  { %715 = vmatmul.mubr.bf16.gmra.mrb[4].mxu1 %v746_v44 }
 0x126   :  { %718 = vmatprep.mubr.bf16.mxu1 %v747_v45 }
 0x12d   :  { %719 = vmatmul.mubr.bf16.gmra.mrb[8].mxu1 %v748_v46 }
 0x12e   :  { %722 = vmatprep.mubr.bf16.mxu1 %v749_v47 }
 0x135   :  { %723 = vmatmul.mubr.bf16.gmra.mrb[12].mxu1 %v750_v48 }
 0x1f0   :  { %v712_v51 = vpop.f32.mrb[0].mxu1 }
 0x1f1   :  { %v500_v53 = vadd.f32 %v712_v51, %v315_v49  ;;  %v435_v54 = vpop.f32.mrb[1].mxu1 }
 0x1f2   :  { %v498_v56 = vadd.f32 %v435_v54, %v313_v50  ;;  %v713_v57 = vpop.f32.mrb[2].mxu1 }
 0x1f3   :  { %516 = vst [vmem:[#allocation2 + $0x10] sm:$0xff] %v500_v53  ;;  %v501_v58 = vadd.f32 %v713_v57, %v316_v52  ;;  %v438_v59 = vpop.f32.mrb[3].mxu1 }
 0x1f4   :  { %514 = vst [vmem:[#allocation2] sm:$0xff] %v498_v56  ;;  %v499_v60 = vadd.f32 %v438_v59, %v314_v55 }
 0x1f5   :  { %517 = vst [vmem:[#allocation2 + $0x18] sm:$0xff] %v501_v58 }
 0x1f6   :  { %515 = vst [vmem:[#allocation2 + $0x8] sm:$0xff] %v499_v60 }
 0x1f8   :  { %v716_v63 = vpop.f32.mrb[4].mxu1 }
 0x1f9   :  { %v504_v1 = vadd.f32 %v716_v63, %v319_v61  ;;  %v451_v2 = vpop.f32.mrb[5].mxu1 }
 0x1fa   :  { %v502_v4 = vadd.f32 %v451_v2, %v317_v62  ;;  %v717_v5 = vpop.f32.mrb[6].mxu1 }
 0x1fb   :  { %520 = vst [vmem:[#allocation2 + $0x30] sm:$0xff] %v504_v1  ;;  %v505_v6 = vadd.f32 %v717_v5, %v320_v0  ;;  %v454_v7 = vpop.f32.mrb[7].mxu1 }
 0x1fc   :  { %518 = vst [vmem:[#allocation2 + $0x20] sm:$0xff] %v502_v4  ;;  %v503_v8 = vadd.f32 %v454_v7, %v318_v3 }
 0x1fd   :  { %521 = vst [vmem:[#allocation2 + $0x38] sm:$0xff] %v505_v6 }
 0x1fe   :  { %519 = vst [vmem:[#allocation2 + $0x28] sm:$0xff] %v503_v8 }
 0x200   :  { %v720_v11 = vpop.f32.mrb[8].mxu1 }
 0x201   :  { %v508_v13 = vadd.f32 %v720_v11, %v323_v9  ;;  %v467_v14 = vpop.f32.mrb[9].mxu1 }
 0x202   :  { %v506_v16 = vadd.f32 %v467_v14, %v321_v10  ;;  %v721_v17 = vpop.f32.mrb[10].mxu1 }
 0x203   :  { %524 = vst [vmem:[#allocation2 + $0x50] sm:$0xff] %v508_v13  ;;  %v509_v18 = vadd.f32 %v721_v17, %v324_v12  ;;  %v470_v19 = vpop.f32.mrb[11].mxu1 }
 0x204   :  { %522 = vst [vmem:[#allocation2 + $0x40] sm:$0xff] %v506_v16  ;;  %v507_v20 = vadd.f32 %v470_v19, %v322_v15 }
 0x205   :  { %525 = vst [vmem:[#allocation2 + $0x58] sm:$0xff] %v509_v18 }
 0x206   :  { %523 = vst [vmem:[#allocation2 + $0x48] sm:$0xff] %v507_v20 }
 0x208   :  { %v724_v23 = vpop.f32.mrb[12].mxu1 }
 0x209   :  { %v512_v25 = vadd.f32 %v724_v23, %v327_v21  ;;  %v483_v26 = vpop.f32.mrb[13].mxu1 }
 0x20a   :  { %v510_v28 = vadd.f32 %v483_v26, %v325_v22  ;;  %v725_v29 = vpop.f32.mrb[14].mxu1 }
 0x20b   :  { %528 = vst [vmem:[#allocation2 + $0x70] sm:$0xff] %v512_v25  ;;  %v513_v30 = vadd.f32 %v725_v29, %v328_v24  ;;  %v486_v31 = vpop.f32.mrb[15].mxu1 }
 0x20c   :  { %526 = vst [vmem:[#allocation2 + $0x60] sm:$0xff] %v510_v28  ;;  %v511_v32 = vadd.f32 %v486_v31, %v326_v27 }
 0x20d   :  { %529 = vst [vmem:[#allocation2 + $0x78] sm:$0xff] %v513_v30 }
 0x20e   :  { %527 = vst [vmem:[#allocation2 + $0x68] sm:$0xff] %v511_v32 }
 0x20f PF:  { %v533_v33 = vld [vmem:[#allocation2] sm:$0xff]  ;;  %v534_v35 = vld [vmem:[#allocation2 + $0x8] sm:$0xff]  ;;  %v535_v38 = vld [vmem:[#allocation2 + $0x10] sm:$0xff] }
 0x210   :  { %v629_v34 = vld [vmem:[%s898_s5] ss:$0 sm:$0xff]  ;;  %v536_v39 = vld [vmem:[#allocation2 + $0x18] sm:$0xff]  ;;  %v538_v44 = vld [vmem:[#allocation2 + $0x28] sm:$0xff] }
 0x211   :  { %v556_v36 = vadd.f32 %v629_v34, %v533_v33  ;;  %v557_v37 = vadd.f32 %v629_v34, %v534_v35  ;;  %v537_v40 = vld [vmem:[#allocation2 + $0x20] sm:$0xff]  ;;  %v558_v41 = vadd.f32 %v629_v34, %v535_v38  ;;  %v559_v42 = vadd.f32 %v629_v34, %v536_v39  ;;  %v539_v45 = vld [vmem:[#allocation2 + $0x30] sm:$0xff]  ;;  %v540_v46 = vld [vmem:[#allocation2 + $0x38] sm:$0xff] }
 0x212   :  { %v560_v43 = vadd.f32 %v629_v34, %v537_v40  ;;  %v561_v47 = vadd.f32 %v629_v34, %v538_v44  ;;  %v562_v48 = vadd.f32 %v629_v34, %v539_v45  ;;  %v563_v49 = vadd.f32 %v629_v34, %v540_v46  ;;  %v541_v50 = vld [vmem:[#allocation2 + $0x40] sm:$0xff]  ;;  %v542_v51 = vld [vmem:[#allocation2 + $0x48] sm:$0xff]  ;;  %v543_v52 = vld [vmem:[#allocation2 + $0x50] sm:$0xff] }
 0x213   :  { %572 = vst [vmem:[%s899_s6] sm:$0xff] %v556_v36  ;;  %573 = vst [vmem:[%s899_s6 + $0x8] sm:$0xff] %v557_v37  ;;  %v564_v53 = vadd.f32 %v629_v34, %v541_v50  ;;  %v565_v54 = vadd.f32 %v629_v34, %v542_v51  ;;  %v566_v55 = vadd.f32 %v629_v34, %v543_v52  ;;  %v544_v56 = vld [vmem:[#allocation2 + $0x58] sm:$0xff]  ;;  %v545_v57 = vld [vmem:[#allocation2 + $0x60] sm:$0xff] }
 0x214   :  { %574 = vst [vmem:[%s899_s6 + $0x10] sm:$0xff] %v558_v41  ;;  %575 = vst [vmem:[%s899_s6 + $0x18] sm:$0xff] %v559_v42  ;;  %v567_v59 = vadd.f32 %v629_v34, %v544_v56  ;;  %v568_v60 = vadd.f32 %v629_v34, %v545_v57  ;;  %v547_v62 = vld [vmem:[#allocation2 + $0x70] sm:$0xff]  ;;  %v548_v63 = vld [vmem:[#allocation2 + $0x78] sm:$0xff] }
 0x215   :  { %576 = vst [vmem:[%s899_s6 + $0x20] sm:$0xff] %v560_v43  ;;  %v546_v58 = vld [vmem:[#allocation2 + $0x68] sm:$0xff]  ;;  %577 = vst [vmem:[%s899_s6 + $0x28] sm:$0xff] %v561_v47  ;;  %v570_v0 = vadd.f32 %v629_v34, %v547_v62  ;;  %v571_v1 = vadd.f32 %v629_v34, %v548_v63 }
 0x216   :  { %578 = vst [vmem:[%s899_s6 + $0x30] sm:$0xff] %v562_v48  ;;  %579 = vst [vmem:[%s899_s6 + $0x38] sm:$0xff] %v563_v49  ;;  %v569_v61 = vadd.f32 %v629_v34, %v546_v58 }
 0x217   :  { %580 = vst [vmem:[%s899_s6 + $0x40] sm:$0xff] %v564_v53  ;;  %581 = vst [vmem:[%s899_s6 + $0x48] sm:$0xff] %v565_v54 }
 0x218   :  { %582 = vst [vmem:[%s899_s6 + $0x50] sm:$0xff] %v566_v55  ;;  %583 = vst [vmem:[%s899_s6 + $0x58] sm:$0xff] %v567_v59 }
 0x219   :  { %584 = vst [vmem:[%s899_s6 + $0x60] sm:$0xff] %v568_v60  ;;  %585 = vst [vmem:[%s899_s6 + $0x68] sm:$0xff] %v569_v61 }
 0x21a   :  { %586 = vst [vmem:[%s899_s6 + $0x70] sm:$0xff] %v570_v0  ;;  %587 = vst [vmem:[%s899_s6 + $0x78] sm:$0xff] %v571_v1 }

// kernel: gcn_forward.2
= control target key start
LH: loop header
LB: loop body
LE: loop exit
PB: predicated region body
PF: predicated region fallthrough
CT: control target
= control target key end

     0   :  { %v910_v0 = vmov 0.0   ;;  %s1029_s0 = inlined_call_operand.<no memory space> [shape: s32[1,1], index: 0, kind: input, shape index: {}]   ;;  %s1030_s1 = inlined_call_operand.<no memory space> [shape: s32[1], index: 1, kind: input, shape index: {}]   ;;  %s1031_s3 = inlined_call_operand.vmem [shape: bf16[128,128], index: 3, kind: input, shape index: {}]   ;;  %s1032_s4 = inlined_call_operand.vmem [shape: bf16[128,128], index: 4, kind: input, shape index: {}]   ;;  %s1033_s5 = inlined_call_operand.vmem [shape: f32[1,128], index: 5, kind: input, shape index: {}]   ;;  %s1034_s6 = inlined_call_operand.vmem [shape: bf16[128,128], index: 6, kind: output, shape index: {}]   ;;  %s1035_s2 = inlined_call_operand.vmem [shape: bf16[128,128], index: 2, kind: input, shape index: {}]  }
   0x1   :  { %11 = sst [smem:[#allocation4]] %s1029_s0  ;;  %p45_p0 = scmp.lt.s32.totalorder %s1029_s0, 0  ;;  %58 = vst [vmem:[#allocation2] sm:$0xff] %v910_v0  ;;  %59 = vst [vmem:[#allocation2 + $0x8] sm:$0xff] %v910_v0 }
   0x2   :  { %60 = vst [vmem:[#allocation2 + $0x10] sm:$0xff] %v910_v0  ;;  %61 = vst [vmem:[#allocation2 + $0x18] sm:$0xff] %v910_v0  ;;  %p682_p1 = scmp.le.s32.totalorder %s1030_s1, 0 }
   0x3   :  { %62 = vst [vmem:[#allocation2 + $0x20] sm:$0xff] %v910_v0  ;;  %63 = vst [vmem:[#allocation2 + $0x28] sm:$0xff] %v910_v0  ;;  %s1037_s0 = smov (!%p45_p0, %s1029_s0), 0  ;;  %v886_v1 = vld [vmem:[%s1032_s4] sm:$0xff] (!%p682_p1)   ;;  %v887_v2 = vld [vmem:[%s1032_s4 + $0x8] sm:$0xff] (!%p682_p1)   ;;  %s82_s1 = sld [smem:[#allocation4]] (!%p682_p1) }
   0x4   :  { %64 = vst [vmem:[#allocation2 + $0x30] sm:$0xff] %v910_v0  ;;  %65 = vst [vmem:[#allocation2 + $0x38] sm:$0xff] %v910_v0  ;;  %s680_s29 = sshll.u32 %s1037_s0, 2  ;;  %78 = sbr.rel (%p682_p1) target bundleno = 527 (0x20f), region = 25  ;;  %821 = vmatprep.subr.bf16.mxu0 (!%p682_p1), %v886_v1  ;;  %v888_v3 = vld [vmem:[%s1032_s4 + $0x10] sm:$0xff] (!%p682_p1)   ;;  %v889_v4 = vld [vmem:[%s1032_s4 + $0x18] sm:$0xff] (!%p682_p1)  }
   0x5   :  { %66 = vst [vmem:[#allocation2 + $0x40] sm:$0xff] %v910_v0  ;;  %67 = vst [vmem:[#allocation2 + $0x48] sm:$0xff] %v910_v0  ;;  %s962_s8 = scalar_lea.vmem %s1035_s2, %s680_s29  ;;  %822 = vmatpush3.bf16.msra.mxu0 (!%p682_p1), %v886_v1  ;;  %v890_v5 = vld [vmem:[%s1032_s4 + $0x20] sm:$0xff] (!%p682_p1)   ;;  %v891_v6 = vld [vmem:[%s1032_s4 + $0x28] sm:$0xff] (!%p682_p1)  }
   0x6   :  { %68 = vst [vmem:[#allocation2 + $0x50] sm:$0xff] %v910_v0  ;;  %69 = vst [vmem:[#allocation2 + $0x58] sm:$0xff] %v910_v0  ;;  %823 = vmatprep.subr.bf16.mxu0 (!%p682_p1), %v887_v2  ;;  %v892_v8 = vld [vmem:[%s1032_s4 + $0x30] sm:$0xff] (!%p682_p1)   ;;  %v893_v9 = vld [vmem:[%s1032_s4 + $0x38] sm:$0xff] (!%p682_p1)  }
   0x7   :  { %70 = vst [vmem:[#allocation2 + $0x60] sm:$0xff] %v910_v0  ;;  %71 = vst [vmem:[#allocation2 + $0x68] sm:$0xff] %v910_v0  ;;  %v902_v17 = vld [vmem:[%s962_s8] sm:$0xff] (!%p682_p1)   ;;  %v903_v42 = vld [vmem:[%s962_s8 + $0x8] sm:$0xff] (!%p682_p1)  }
   0x8   :  { %72 = vst [vmem:[#allocation2 + $0x70] sm:$0xff] %v910_v0  ;;  %73 = vst [vmem:[#allocation2 + $0x78] sm:$0xff] %v910_v0  ;;  %869 = vmatprep.mubr.bf16.mxu1 (!%p682_p1), %v902_v17  ;;  %v904_v43 = vld [vmem:[%s962_s8 + $0x10] sm:$0xff] (!%p682_p1)   ;;  %v905_v44 = vld [vmem:[%s962_s8 + $0x18] sm:$0xff] (!%p682_p1)  }
   0x9   :  { %824 = vmatpush3.bf16.msra.mxu0 (!%p682_p1), %v887_v2  ;;  %s683_s19 = sshll.u32 (!%p682_p1), %s82_s1, 7  ;;  %v906_v45 = vld [vmem:[%s962_s8 + $0x20] sm:$0xff] (!%p682_p1)   ;;  %v907_v46 = vld [vmem:[%s962_s8 + $0x28] sm:$0xff] (!%p682_p1)   ;;  %v908_v47 = vld [vmem:[%s962_s8 + $0x30] sm:$0xff] (!%p682_p1)  }
   0xa   :  { %825 = vmatprep.subr.bf16.mxu0 (!%p682_p1), %v888_v3  ;;  %s84_s20 = sshra.s32 (!%p682_p1), %s683_s19, 3  ;;  %v909_v48 = vld [vmem:[%s962_s8 + $0x38] sm:$0xff] (!%p682_p1)   ;;  %v315_v49 = vld [vmem:[#allocation2 + $0x10] sm:$0xff] (!%p682_p1)  ;;  %v313_v50 = vld [vmem:[#allocation2] sm:$0xff] (!%p682_p1) }
   0xb   :  { %s684_s23 = sshll.u32 %s84_s20, 2  ;;  %v316_v52 = vld [vmem:[#allocation2 + $0x18] sm:$0xff]  ;;  %v314_v55 = vld [vmem:[#allocation2 + $0x8] sm:$0xff]  ;;  %v319_v61 = vld [vmem:[#allocation2 + $0x30] sm:$0xff] }
   0xc   :  { %s87_s26 = scalar_lea.vmem %s1031_s3, %s684_s23  ;;  %v317_v62 = vld [vmem:[#allocation2 + $0x20] sm:$0xff]  ;;  %v320_v0 = vld [vmem:[#allocation2 + $0x38] sm:$0xff] }
   0xd   :  { %826 = vmatpush3.bf16.msra.mxu0 %v888_v3  ;;  %v894_v7 = vld [vmem:[%s87_s26] sm:$0xff]   ;;  %v895_v10 = vld [vmem:[%s87_s26 + $0x8] sm:$0xff]   ;;  %v896_v11 = vld [vmem:[%s87_s26 + $0x10] sm:$0xff]  }
   0xe   :  { %827 = vmatprep.subr.bf16.mxu0 %v889_v4  ;;  %837 = vmatprep.mubr.bf16.mxu0 %v894_v7  ;;  %v897_v12 = vld [vmem:[%s87_s26 + $0x18] sm:$0xff]   ;;  %v898_v13 = vld [vmem:[%s87_s26 + $0x20] sm:$0xff]   ;;  %v899_v14 = vld [vmem:[%s87_s26 + $0x28] sm:$0xff]  }
   0xf   :  { %v900_v15 = vld [vmem:[%s87_s26 + $0x30] sm:$0xff]   ;;  %v901_v16 = vld [vmem:[%s87_s26 + $0x38] sm:$0xff]   ;;  %v318_v3 = vld [vmem:[#allocation2 + $0x28] sm:$0xff] }
  0x11   :  { %828 = vmatpush3.bf16.msra.mxu0 %v889_v4 }
  0x12   :  { %829 = vmatprep.subr.bf16.mxu0 %v890_v5 }
  0x15   :  { %830 = vmatpush3.bf16.msra.mxu0 %v890_v5 }
  0x16   :  { %831 = vmatprep.subr.bf16.mxu0 %v891_v6 }
  0x19   :  { %832 = vmatpush3.bf16.msra.mxu0 %v891_v6 }
  0x1a   :  { %833 = vmatprep.subr.bf16.mxu0 %v892_v8 }
  0x1d   :  { %834 = vmatpush3.bf16.msra.mxu0 %v892_v8 }
  0x1e   :  { %835 = vmatprep.subr.bf16.mxu0 %v893_v9 }
  0x21   :  { %836 = vmatpush3.bf16.msra.mxu0 %v893_v9  ;;  %v323_v9 = vld [vmem:[#allocation2 + $0x50] sm:$0xff] }
  0x24   :  { %838 = vmatmul.mubr.bf16.vlgmr.msra.gmra.mrb[0].mxu0 %v895_v10  ;;  %v321_v10 = vld [vmem:[#allocation2 + $0x40] sm:$0xff] }
  0x25   :  { %841 = vmatprep.mubr.bf16.mxu0 %v896_v11 }
  0x2c   :  { %842 = vmatmul.mubr.bf16.gmra.mrb[4].mxu0 %v897_v12  ;;  %v324_v12 = vld [vmem:[#allocation2 + $0x58] sm:$0xff] }
  0x2d   :  { %845 = vmatprep.mubr.bf16.mxu0 %v898_v13 }
  0x34   :  { %846 = vmatmul.mubr.bf16.gmra.mrb[8].mxu0 %v899_v14 }
  0x35   :  { %849 = vmatprep.mubr.bf16.mxu0 %v900_v15  ;;  %v322_v15 = vld [vmem:[#allocation2 + $0x48] sm:$0xff] }
  0x3c   :  { %850 = vmatmul.mubr.bf16.gmra.mrb[12].mxu0 %v901_v16 }
  0xf7   :  { %v839_v18 = vpop.f32.mrb[0].mxu0 }
  0xf8   :  { %v250_v19 = vpop.f32.mrb[1].mxu0 }
  0xf9   :  { %v840_v20 = vpop.f32.mrb[2].mxu0 }
  0xfa   :  { %v346_v21 = vpack.c.bf16 %v840_v20, %v839_v18  ;;  %v253_v22 = vpop.f32.mrb[3].mxu0 }
  0xfb   :  { %v345_v23 = vpack.c.bf16 %v253_v22, %v250_v19  ;;  %v325_v22 = vld [vmem:[#allocation2 + $0x60] sm:$0xff] }
  0xfd   :  { %853 = vmatprep.subr.bf16.mxu1 %v345_v23 }
  0xfe   :  { %854 = vmatpush3.bf16.msra.mxu1 %v345_v23 }
  0xff   :  { %v843_v24 = vpop.f32.mrb[4].mxu0  ;;  %855 = vmatprep.subr.bf16.mxu1 %v346_v21 }
 0x100   :  { %v266_v25 = vpop.f32.mrb[5].mxu0 }
 0x101   :  { %v844_v26 = vpop.f32.mrb[6].mxu0 }
 0x102   :  { %v348_v27 = vpack.c.bf16 %v844_v26, %v843_v24  ;;  %v269_v28 = vpop.f32.mrb[7].mxu0  ;;  %856 = vmatpush3.bf16.msra.mxu1 %v346_v21  ;;  %v327_v21 = vld [vmem:[#allocation2 + $0x70] sm:$0xff]  ;;  %v328_v24 = vld [vmem:[#allocation2 + $0x78] sm:$0xff] }
 0x103   :  { %v347_v29 = vpack.c.bf16 %v269_v28, %v266_v25 }
 0x105   :  { %857 = vmatprep.subr.bf16.mxu1 %v347_v29 }
 0x106   :  { %858 = vmatpush3.bf16.msra.mxu1 %v347_v29 }
 0x107   :  { %v847_v30 = vpop.f32.mrb[8].mxu0  ;;  %859 = vmatprep.subr.bf16.mxu1 %v348_v27 }
 0x108   :  { %v282_v31 = vpop.f32.mrb[9].mxu0 }
 0x109   :  { %v848_v32 = vpop.f32.mrb[10].mxu0 }
 0x10a   :  { %v350_v33 = vpack.c.bf16 %v848_v32, %v847_v30  ;;  %v285_v34 = vpop.f32.mrb[11].mxu0  ;;  %860 = vmatpush3.bf16.msra.mxu1 %v348_v27  ;;  %v326_v27 = vld [vmem:[#allocation2 + $0x68] sm:$0xff] }
 0x10b   :  { %v349_v35 = vpack.c.bf16 %v285_v34, %v282_v31 }
 0x10d   :  { %861 = vmatprep.subr.bf16.mxu1 %v349_v35 }
 0x10e   :  { %862 = vmatpush3.bf16.msra.mxu1 %v349_v35 }
 0x10f   :  { %v851_v36 = vpop.f32.mrb[12].mxu0  ;;  %863 = vmatprep.subr.bf16.mxu1 %v350_v33 }
 0x110   :  { %v298_v37 = vpop.f32.mrb[13].mxu0 }
 0x111   :  { %v852_v38 = vpop.f32.mrb[14].mxu0 }
 0x112   :  { %v352_v39 = vpack.c.bf16 %v852_v38, %v851_v36  ;;  %v301_v40 = vpop.f32.mrb[15].mxu0  ;;  %864 = vmatpush3.bf16.msra.mxu1 %v350_v33 }
 0x113   :  { %v351_v41 = vpack.c.bf16 %v301_v40, %v298_v37 }
 0x115   :  { %865 = vmatprep.subr.bf16.mxu1 %v351_v41 }
 0x116   :  { %866 = vmatpush3.bf16.msra.mxu1 %v351_v41 }
 0x117   :  { %867 = vmatprep.subr.bf16.mxu1 %v352_v39 }
 0x11a   :  { %868 = vmatpush3.bf16.msra.mxu1 %v352_v39 }
 0x11d   :  { %870 = vmatmul.mubr.bf16.vlgmr.msra.gmra.mrb[0].mxu1 %v903_v42 }
 0x11e   :  { %873 = vmatprep.mubr.bf16.mxu1 %v904_v43 }
 0x125   :  { %874 = vmatmul.mubr.bf16.gmra.mrb[4].mxu1 %v905_v44 }
 0x126   :  { %877 = vmatprep.mubr.bf16.mxu1 %v906_v45 }
 0x12d   :  { %878 = vmatmul.mubr.bf16.gmra.mrb[8].mxu1 %v907_v46 }
 0x12e   :  { %881 = vmatprep.mubr.bf16.mxu1 %v908_v47 }
 0x135   :  { %882 = vmatmul.mubr.bf16.gmra.mrb[12].mxu1 %v909_v48 }
 0x1f0   :  { %v871_v51 = vpop.f32.mrb[0].mxu1 }
 0x1f1   :  { %v500_v53 = vadd.f32 %v871_v51, %v315_v49  ;;  %v435_v54 = vpop.f32.mrb[1].mxu1 }
 0x1f2   :  { %v498_v56 = vadd.f32 %v435_v54, %v313_v50  ;;  %v872_v57 = vpop.f32.mrb[2].mxu1 }
 0x1f3   :  { %516 = vst [vmem:[#allocation2 + $0x10] sm:$0xff] %v500_v53  ;;  %v501_v58 = vadd.f32 %v872_v57, %v316_v52  ;;  %v438_v59 = vpop.f32.mrb[3].mxu1 }
 0x1f4   :  { %514 = vst [vmem:[#allocation2] sm:$0xff] %v498_v56  ;;  %v499_v60 = vadd.f32 %v438_v59, %v314_v55 }
 0x1f5   :  { %517 = vst [vmem:[#allocation2 + $0x18] sm:$0xff] %v501_v58 }
 0x1f6   :  { %515 = vst [vmem:[#allocation2 + $0x8] sm:$0xff] %v499_v60 }
 0x1f8   :  { %v875_v63 = vpop.f32.mrb[4].mxu1 }
 0x1f9   :  { %v504_v1 = vadd.f32 %v875_v63, %v319_v61  ;;  %v451_v2 = vpop.f32.mrb[5].mxu1 }
 0x1fa   :  { %v502_v4 = vadd.f32 %v451_v2, %v317_v62  ;;  %v876_v5 = vpop.f32.mrb[6].mxu1 }
 0x1fb   :  { %520 = vst [vmem:[#allocation2 + $0x30] sm:$0xff] %v504_v1  ;;  %v505_v6 = vadd.f32 %v876_v5, %v320_v0  ;;  %v454_v7 = vpop.f32.mrb[7].mxu1 }
 0x1fc   :  { %518 = vst [vmem:[#allocation2 + $0x20] sm:$0xff] %v502_v4  ;;  %v503_v8 = vadd.f32 %v454_v7, %v318_v3 }
 0x1fd   :  { %521 = vst [vmem:[#allocation2 + $0x38] sm:$0xff] %v505_v6 }
 0x1fe   :  { %519 = vst [vmem:[#allocation2 + $0x28] sm:$0xff] %v503_v8 }
 0x200   :  { %v879_v11 = vpop.f32.mrb[8].mxu1 }
 0x201   :  { %v508_v13 = vadd.f32 %v879_v11, %v323_v9  ;;  %v467_v14 = vpop.f32.mrb[9].mxu1 }
 0x202   :  { %v506_v16 = vadd.f32 %v467_v14, %v321_v10  ;;  %v880_v17 = vpop.f32.mrb[10].mxu1 }
 0x203   :  { %524 = vst [vmem:[#allocation2 + $0x50] sm:$0xff] %v508_v13  ;;  %v509_v18 = vadd.f32 %v880_v17, %v324_v12  ;;  %v470_v19 = vpop.f32.mrb[11].mxu1 }
 0x204   :  { %522 = vst [vmem:[#allocation2 + $0x40] sm:$0xff] %v506_v16  ;;  %v507_v20 = vadd.f32 %v470_v19, %v322_v15 }
 0x205   :  { %525 = vst [vmem:[#allocation2 + $0x58] sm:$0xff] %v509_v18 }
 0x206   :  { %523 = vst [vmem:[#allocation2 + $0x48] sm:$0xff] %v507_v20 }
 0x208   :  { %v883_v23 = vpop.f32.mrb[12].mxu1 }
 0x209   :  { %v512_v25 = vadd.f32 %v883_v23, %v327_v21  ;;  %v483_v26 = vpop.f32.mrb[13].mxu1 }
 0x20a   :  { %v510_v28 = vadd.f32 %v483_v26, %v325_v22  ;;  %v884_v29 = vpop.f32.mrb[14].mxu1 }
 0x20b   :  { %528 = vst [vmem:[#allocation2 + $0x70] sm:$0xff] %v512_v25  ;;  %v513_v30 = vadd.f32 %v884_v29, %v328_v24  ;;  %v486_v31 = vpop.f32.mrb[15].mxu1 }
 0x20c   :  { %526 = vst [vmem:[#allocation2 + $0x60] sm:$0xff] %v510_v28  ;;  %v511_v32 = vadd.f32 %v486_v31, %v326_v27 }
 0x20d   :  { %529 = vst [vmem:[#allocation2 + $0x78] sm:$0xff] %v513_v30 }
 0x20e   :  { %527 = vst [vmem:[#allocation2 + $0x68] sm:$0xff] %v511_v32 }
 0x20f PF:  { %v533_v33 = vld [vmem:[#allocation2] sm:$0xff]  ;;  %v534_v34 = vld [vmem:[#allocation2 + $0x8] sm:$0xff]  ;;  %v535_v38 = vld [vmem:[#allocation2 + $0x10] sm:$0xff] }
 0x210   :  { %v709_v35 = vld [vmem:[%s1033_s5] ss:$0 sm:$0xff]  ;;  %v536_v39 = vld [vmem:[#allocation2 + $0x18] sm:$0xff]  ;;  %v538_v43 = vld [vmem:[#allocation2 + $0x28] sm:$0xff] }
 0x211   :  { %v556_v36 = vadd.f32 %v709_v35, %v533_v33  ;;  %v557_v37 = vadd.f32 %v709_v35, %v534_v34  ;;  %v537_v40 = vld [vmem:[#allocation2 + $0x20] sm:$0xff]  ;;  %v558_v41 = vadd.f32 %v709_v35, %v535_v38  ;;  %v559_v42 = vadd.f32 %v709_v35, %v536_v39  ;;  %v539_v45 = vld [vmem:[#allocation2 + $0x30] sm:$0xff]  ;;  %v540_v46 = vld [vmem:[#allocation2 + $0x38] sm:$0xff] }
 0x212   :  { %v560_v44 = vadd.f32 %v709_v35, %v537_v40  ;;  %v561_v49 = vadd.f32 %v709_v35, %v538_v43  ;;  %v562_v50 = vadd.f32 %v709_v35, %v539_v45  ;;  %v541_v51 = vld [vmem:[#allocation2 + $0x40] sm:$0xff]  ;;  %v542_v52 = vld [vmem:[#allocation2 + $0x48] sm:$0xff]  ;;  %v543_v53 = vld [vmem:[#allocation2 + $0x50] sm:$0xff]  ;;  %v563_v57 = vadd.f32 %v709_v35, %v540_v46 }
 0x213   :  { %v572_v47 = vmax.f32 %v556_v36, 0.0  ;;  %v573_v48 = vmax.f32 %v557_v37, 0.0  ;;  %v574_v54 = vmax.f32 %v558_v41, 0.0  ;;  %v575_v55 = vmax.f32 %v559_v42, 0.0  ;;  %v544_v58 = vld [vmem:[#allocation2 + $0x58] sm:$0xff]  ;;  %v545_v59 = vld [vmem:[#allocation2 + $0x60] sm:$0xff] }
 0x214   :  { %v576_v56 = vmax.f32 %v560_v44, 0.0  ;;  %v577_v61 = vmax.f32 %v561_v49, 0.0  ;;  %v578_v62 = vmax.f32 %v562_v50, 0.0  ;;  %v564_v63 = vadd.f32 %v709_v35, %v541_v51  ;;  %v547_v5 = vld [vmem:[#allocation2 + $0x70] sm:$0xff]  ;;  %v548_v6 = vld [vmem:[#allocation2 + $0x78] sm:$0xff] }
 0x215   :  { %v745_v60 = vpack.c.bf16 %v573_v48, %v572_v47  ;;  %v546_v0 = vld [vmem:[#allocation2 + $0x68] sm:$0xff]  ;;  %v750_v1 = vpack.c.bf16 %v575_v55, %v574_v54  ;;  %v579_v2 = vmax.f32 %v563_v57, 0.0  ;;  %v565_v3 = vadd.f32 %v709_v35, %v542_v52 }
 0x216   :  { %v566_v4 = vadd.f32 %v709_v35, %v543_v53  ;;  %v755_v7 = vpack.c.bf16 %v577_v61, %v576_v56  ;;  %v580_v8 = vmax.f32 %v564_v63, 0.0  ;;  %v567_v9 = vadd.f32 %v709_v35, %v544_v58 }
 0x217   :  { %746 = vst [vmem:[%s1034_s6] sm:$0xff] %v745_v60   ;;  %v568_v10 = vadd.f32 %v709_v35, %v545_v59  ;;  %782 = vst [vmem:[%s1034_s6 + $0x8] sm:$0xff] %v750_v1   ;;  %v760_v11 = vpack.c.bf16 %v579_v2, %v578_v62  ;;  %v581_v12 = vmax.f32 %v565_v3, 0.0  ;;  %v569_v14 = vadd.f32 %v709_v35, %v546_v0 }
 0x218   :  { %v582_v13 = vmax.f32 %v566_v4, 0.0  ;;  %783 = vst [vmem:[%s1034_s6 + $0x10] sm:$0xff] %v755_v7   ;;  %v583_v15 = vmax.f32 %v567_v9, 0.0  ;;  %v570_v17 = vadd.f32 %v709_v35, %v547_v5  ;;  %v571_v18 = vadd.f32 %v709_v35, %v548_v6 }
 0x219   :  { %v584_v16 = vmax.f32 %v568_v10, 0.0  ;;  %784 = vst [vmem:[%s1034_s6 + $0x18] sm:$0xff] %v760_v11   ;;  %v765_v19 = vpack.c.bf16 %v581_v12, %v580_v8  ;;  %v585_v20 = vmax.f32 %v569_v14, 0.0 }
 0x21a   :  { %v770_v21 = vpack.c.bf16 %v583_v15, %v582_v13  ;;  %v586_v22 = vmax.f32 %v570_v17, 0.0  ;;  %v587_v23 = vmax.f32 %v571_v18, 0.0 }
 0x21b   :  { %785 = vst [vmem:[%s1034_s6 + $0x20] sm:$0xff] %v765_v19   ;;  %v775_v24 = vpack.c.bf16 %v585_v20, %v584_v16 }
 0x21c   :  { %786 = vst [vmem:[%s1034_s6 + $0x28] sm:$0xff] %v770_v21   ;;  %v780_v25 = vpack.c.bf16 %v587_v23, %v586_v22 }
 0x21d   :  { %787 = vst [vmem:[%s1034_s6 + $0x30] sm:$0xff] %v775_v24  }
 0x21e   :  { %788 = vst [vmem:[%s1034_s6 + $0x38] sm:$0xff] %v780_v25  }

</bundles_post_ra>
